<compile_context>
chip_gen: v7x
topology: tpu7x:2x2x1
jax: 0.10.0
libtpu: 0.0.40
codegen_flags: <defaults>
</compile_context>

<pallas_src>
import jax
import jax.numpy as jnp
from jax.experimental import pallas as pl
from jax.experimental.pallas import tpu as pltpu

_BN_EPS = 1e-5
# Leave headroom below v7x's 64 MiB physical VMEM; safe on v5e/v6e (128 MiB).
_VMEM_LIMIT_BYTES = 48 * 1024 * 1024


# ----------------------------- kernels --------------------------------------


def _stats_kernel(x_ref, sum_ref, ssq_ref):
    """Pass 1: per-channel sum and sum-of-squares (axis-0 reductions)."""
    @pl.when(pl.program_id(0) == 0)
    def _init():
        sum_ref[...] = jnp.zeros_like(sum_ref)
        ssq_ref[...] = jnp.zeros_like(ssq_ref)

    x = x_ref[...].astype(jnp.float32)                      # (TM, Cin)
    sum_ref[...] += jnp.sum(x, axis=0, keepdims=True)       # (1, Cin)
    ssq_ref[...] += jnp.sum(x * x, axis=0, keepdims=True)   # (1, Cin)


def _main_kernel(scale_ref, shift_ref, w_ref, x_ref, o_ref):
    """Pass 2: fused BN(FMA) + ReLU + 2x2 avg-pool + 1x1-conv matmul.

    x_ref  : (TH, Wo, 2*Cin)  -- adjacent W columns packed along channels
    w_ref  : (Cin, Cout)      -- conv weight with the 1/4 pool factor folded in
    o_ref  : (TH//2 * Wo, Cout)
    """
    TH, Wo, C2 = x_ref.shape
    Cin = C2 // 2
    THo = TH // 2

    scale = scale_ref[...].reshape(1, 1, C2)   # (1,1,2*Cin) f32
    shift = shift_ref[...].reshape(1, 1, C2)

    # BN folded into one FMA over the whole block, then ReLU (precedes pool).
    x = x_ref[...].astype(jnp.float32)                     # (TH, Wo, 2*Cin)
    r = jnp.maximum(x * scale + shift, 0.0)

    # W-pool: add the packed even/odd channel halves (static lane slices).
    pw = r[:, :, :Cin] + r[:, :, Cin:]                     # (TH, Wo, Cin)

    # H-pool: split the leading (non-tiled) dim -- free view -- and add rows.
    pw = pw.reshape(THo, 2, Wo, Cin)
    pooled = pw[:, 0, :, :] + pw[:, 1, :, :]               # (THo, Wo, Cin)

    # 1x1 conv == channel matmul on the MXU, on the 4x smaller pooled tile
    # (pool and 1x1 conv commute; 1/4 already folded into w_ref).
    y = jnp.dot(
        pooled.reshape(THo * Wo, Cin),
        w_ref[...],
        preferred_element_type=jnp.float32,
    )
    o_ref[...] = y.astype(o_ref.dtype)


# ----------------------------- wrappers --------------------------------------


def _pick_reduce_tile(total, target=4096, align=8):
    """Largest t <= target with t % align == 0 and total % t == 0 (else total)."""
    t = min(target, total)
    t -= t % align
    while t >= align:
        if total % t == 0:
            return t
        t -= align
    return total


def _pick_row_tile(H, Wo, C2, itemsize, budget_bytes=2 * 1024 * 1024):
    """Largest even divisor of H whose (t, Wo, 2*Cin) tile fits the budget."""
    best = 2
    for t in range(2, H + 1, 2):
        if H % t == 0 and t * Wo * C2 * itemsize <= budget_bytes:
            best = t
    return best


def transition_layer_nhwc(x_nhwc, conv_w, gamma, beta):
    """TransitionLayer forward on NHWC input. conv_w: (Cout, Cin, 1, 1)."""
    N, H, W, Cin = x_nhwc.shape
    Cout = conv_w.shape[0]
    assert H % 2 == 0 and W % 2 == 0

    dtype = x_nhwc.dtype
    itemsize = jnp.dtype(dtype).itemsize
    M = N * H * W
    Ho, Wo = H // 2, W // 2

    # ---- pass 1: per-channel batch statistics (tiled accumulator) ----
    x2 = x_nhwc.reshape(M, Cin)                               # free row-major reshape
    TM = _pick_reduce_tile(M)
    s, ssq = pl.pallas_call(
        _stats_kernel,
        grid=(M // TM,),
        in_specs=[pl.BlockSpec((TM, Cin), lambda i: (i, 0))],
        out_specs=(
            pl.BlockSpec((1, Cin), lambda i: (0, 0)),
            pl.BlockSpec((1, Cin), lambda i: (0, 0)),
        ),
        out_shape=(
            jax.ShapeDtypeStruct((1, Cin), jnp.float32),
            jax.ShapeDtypeStruct((1, Cin), jnp.float32),
        ),
        compiler_params=pltpu.CompilerParams(
            dimension_semantics=("arbitrary",),
            vmem_limit_bytes=_VMEM_LIMIT_BYTES,
        ),
    )(x2)

    # Fold BN into a single per-channel FMA: xn = x * scale + shift.
    inv_m = 1.0 / float(M)
    mean = s * inv_m
    var = ssq * inv_m - mean * mean            # biased variance (training-mode BN)
    scale = gamma.reshape(1, Cin).astype(jnp.float32) * jax.lax.rsqrt(var + _BN_EPS)
    shift = beta.reshape(1, Cin).astype(jnp.float32) - mean * scale
    # Duplicate per-channel params to match the W-pair packed channel layout.
    scale2 = jnp.concatenate([scale, scale], axis=1)          # (1, 2*Cin)
    shift2 = jnp.concatenate([shift, shift], axis=1)          # (1, 2*Cin)

    # Conv weight as (Cin, Cout) with the 1/4 avg-pool factor folded in.
    w2d = conv_w.reshape(Cout, Cin).T.astype(jnp.float32) * 0.25

    # ---- pass 2: BN + ReLU + pool + 1x1 conv, tiled over N*H rows ----
    # Pack adjacent W columns into the channel dim (free row-major reshape).
    x_pairs = x_nhwc.reshape(N * H, Wo, 2 * Cin)
    TH = _pick_row_tile(H, Wo, 2 * Cin, itemsize)
    THo = TH // 2

    out2d = pl.pallas_call(
        _main_kernel,
        grid=(N * H // TH,),
        in_specs=[
            pl.BlockSpec((1, 2 * Cin), lambda i: (0, 0)),          # scale  (resident)
            pl.BlockSpec((1, 2 * Cin), lambda i: (0, 0)),          # shift  (resident)
            pl.BlockSpec((Cin, Cout), lambda i: (0, 0)),           # weight (resident)
            pl.BlockSpec((TH, Wo, 2 * Cin), lambda i: (i, 0, 0)),  # activation rows
        ],
        out_specs=pl.BlockSpec((THo * Wo, Cout), lambda i: (i, 0)),
        out_shape=jax.ShapeDtypeStruct((N * Ho * Wo, Cout), dtype),
        compiler_params=pltpu.CompilerParams(
            dimension_semantics=("parallel",),
            vmem_limit_bytes=_VMEM_LIMIT_BYTES,
        ),
    )(scale2, shift2, w2d, x_pairs)

    return out2d.reshape(N, Ho, Wo, Cout)


def transition_layer(x_nchw, conv_w, gamma, beta, padding=0):
    """TransitionLayer forward on NCHW input (PyTorch layout)."""
    # TODO(synk): padding > 0 for the 1x1 conv is not implemented (DenseNet
    # transition layers use padding=0).
    assert padding == 0, "padding > 0 not implemented"
    # TODO(synk): the NCHW<->NHWC transposes are two extra HBM passes done by
    # XLA; keep the surrounding model NHWC and call transition_layer_nhwc
    # directly to eliminate them.
    x_nhwc = jnp.transpose(x_nchw, (0, 2, 3, 1))
    out_nhwc = transition_layer_nhwc(x_nhwc, conv_w, gamma, beta)
    return jnp.transpose(out_nhwc, (0, 3, 1, 2))


# ----------------------------- reference & test ------------------------------


def _reference(x_nchw, conv_w, gamma, beta):
    """Pure-JAX reference matching PyTorch training-mode forward."""
    x = x_nchw.astype(jnp.float32)
    mean = jnp.mean(x, axis=(0, 2, 3), keepdims=True)
    var = jnp.mean((x - mean) ** 2, axis=(0, 2, 3), keepdims=True)
    xn = (x - mean) * jax.lax.rsqrt(var + _BN_EPS)
    xn = xn * gamma.reshape(1, -1, 1, 1) + beta.reshape(1, -1, 1, 1)
    xr = jnp.maximum(xn, 0.0)
    w2d = conv_w.reshape(conv_w.shape[0], conv_w.shape[1])
    y = jnp.einsum("nchw,oc->nohw", xr, w2d)
    N, Co, H, W = y.shape
    return jnp.mean(y.reshape(N, Co, H // 2, 2, W // 2, 2), axis=(3, 5))


if __name__ == "__main__":
    # Module config: inf=4, outf=8, padding=0, filter_size=1, bias=False
    N, Cin, H, W = 2, 4, 16, 16
    Cout = 8

    key = jax.random.PRNGKey(0)
    kx, kw = jax.random.split(key)
    x = jax.random.normal(kx, (N, Cin, H, W), dtype=jnp.float32)
    conv_w = 0.1 * jax.random.normal(kw, (Cout, Cin, 1, 1), dtype=jnp.float32)
    gamma = jnp.ones((Cin,), dtype=jnp.float32)   # BatchNorm2d default init
    beta = jnp.zeros((Cin,), dtype=jnp.float32)

    out = transition_layer(x, conv_w, gamma, beta, padding=0)
    out = jax.block_until_ready(out)

    ref = _reference(x, conv_w, gamma, beta)
    assert out.shape == (N, Cout, H // 2, W // 2), out.shape
    assert jnp.allclose(out, ref, atol=1e-4, rtol=1e-4)

    print("KERNEL_OK")
</pallas_src>

<mosaic_0001>
module attributes {stable_mosaic.version = 11 : i64} {
  func.func @_stats_kernel(%arg0: i32, %arg1: memref<512x4xf32, #tpu.memory_space<vmem>>, %arg2: memref<1x4xf32, #tpu.memory_space<vmem>>, %arg3: memref<1x4xf32, #tpu.memory_space<vmem>>) attributes {dimension_semantics = [#tpu.dimension_semantics<arbitrary>], iteration_bounds = array<i64: 1>, scalar_prefetch = 0 : i64, scratch_operands = 0 : i64, tpu.core_type = #tpu.core_type<tc>, window_params = [{transform_indices = @transform_0, window_bounds = array<i64: 512, 4>}, {pipeline_mode = #tpu.pipeline_mode<synchronous>, transform_indices = @transform_1, window_bounds = array<i64: 1, 4>}, {pipeline_mode = #tpu.pipeline_mode<synchronous>, transform_indices = @transform_2, window_bounds = array<i64: 1, 4>}]} {
    %c0_i32 = arith.constant 0 : i32
    %0 = arith.cmpi eq, %arg0, %c0_i32 : i32
    %1 = arith.extui %0 : i1 to i32
    %c0_i32_0 = arith.constant 0 : i32
    %2 = arith.cmpi ne, %1, %c0_i32_0 : i32
    scf.if %2 {
      %cst_11 = arith.constant 0.000000e+00 : f32
      %15 = vector.broadcast %cst_11 : f32 to vector<1x4xf32>
      %c0_12 = arith.constant 0 : index
      %c0_13 = arith.constant 0 : index
      %16 = vector.load %arg2[%c0_12, %c0_13] : memref<1x4xf32, #tpu.memory_space<vmem>>, vector<1x4xf32>
      tpu.vector_store %arg2[%c0_12, %c0_13], %15 {strides = array<i32>} : memref<1x4xf32, #tpu.memory_space<vmem>>, vector<1x4xf32>,
      %cst_14 = arith.constant 0.000000e+00 : f32
      %17 = vector.broadcast %cst_14 : f32 to vector<1x4xf32>
      %c0_15 = arith.constant 0 : index
      %c0_16 = arith.constant 0 : index
      %18 = vector.load %arg3[%c0_15, %c0_16] : memref<1x4xf32, #tpu.memory_space<vmem>>, vector<1x4xf32>
      tpu.vector_store %arg3[%c0_15, %c0_16], %17 {strides = array<i32>} : memref<1x4xf32, #tpu.memory_space<vmem>>, vector<1x4xf32>,
    } else {
    }
    %c0 = arith.constant 0 : index
    %c0_1 = arith.constant 0 : index
    %3 = vector.load %arg1[%c0, %c0_1] : memref<512x4xf32, #tpu.memory_space<vmem>>, vector<512x4xf32>
    %c0_2 = arith.constant 0 : index
    %c0_3 = arith.constant 0 : index
    %4 = vector.load %arg2[%c0_2, %c0_3] : memref<1x4xf32, #tpu.memory_space<vmem>>, vector<1x4xf32>
    %cst = arith.constant dense<0.000000e+00> : vector<4xf32>
    %5 = vector.multi_reduction <add>, %3, %cst [0] : vector<512x4xf32> to vector<4xf32>
    %6 = vector.shape_cast %5 : vector<4xf32> to vector<1x4xf32>
    %7 = arith.addf %4, %6 : vector<1x4xf32>
    %c0_4 = arith.constant 0 : index
    %c0_5 = arith.constant 0 : index
    %8 = vector.load %arg2[%c0_4, %c0_5] : memref<1x4xf32, #tpu.memory_space<vmem>>, vector<1x4xf32>
    tpu.vector_store %arg2[%c0_4, %c0_5], %7 {strides = array<i32>} : memref<1x4xf32, #tpu.memory_space<vmem>>, vector<1x4xf32>,
    %c0_6 = arith.constant 0 : index
    %c0_7 = arith.constant 0 : index
    %9 = vector.load %arg3[%c0_6, %c0_7] : memref<1x4xf32, #tpu.memory_space<vmem>>, vector<1x4xf32>
    %10 = arith.mulf %3, %3 : vector<512x4xf32>
    %cst_8 = arith.constant dense<0.000000e+00> : vector<4xf32>
    %11 = vector.multi_reduction <add>, %10, %cst_8 [0] : vector<512x4xf32> to vector<4xf32>
    %12 = vector.shape_cast %11 : vector<4xf32> to vector<1x4xf32>
    %13 = arith.addf %9, %12 : vector<1x4xf32>
    %c0_9 = arith.constant 0 : index
    %c0_10 = arith.constant 0 : index
    %14 = vector.load %arg3[%c0_9, %c0_10] : memref<1x4xf32, #tpu.memory_space<vmem>>, vector<1x4xf32>
    tpu.vector_store %arg3[%c0_9, %c0_10], %13 {strides = array<i32>} : memref<1x4xf32, #tpu.memory_space<vmem>>, vector<1x4xf32>,
    return
  }
  func.func @transform_0(%arg0: i32) -> (i32, i32) {
    %c0_i32 = arith.constant 0 : i32
    %c0_i32_0 = arith.constant 0 : i32
    return %arg0, %c0_i32 : i32, i32
  }
  func.func @transform_1(%arg0: i32) -> (i32, i32) {
    %c0_i32 = arith.constant 0 : i32
    %c0_i32_0 = arith.constant 0 : i32
    %c0_i32_1 = arith.constant 0 : i32
    return %c0_i32, %c0_i32_0 : i32, i32
  }
  func.func @transform_2(%arg0: i32) -> (i32, i32) {
    %c0_i32 = arith.constant 0 : i32
    %c0_i32_0 = arith.constant 0 : i32
    %c0_i32_1 = arith.constant 0 : i32
    return %c0_i32, %c0_i32_0 : i32, i32
  }
}

</mosaic_0001>

<bundles_post_ra>
// kernel: tpu_custom_call.1
= control target key start
LH: loop header
LB: loop body
LE: loop exit
PB: predicated region body
PF: predicated region fallthrough
CT: control target
= control target key end

     0   :  { %8 = vsyncpa [#allocation3], 0  ;;  %s1156_s0 = inlined_call_operand.vmem [shape: f32[512,4], index: 0, kind: input, shape index: {}]   ;;  %s1157_s1 = inlined_call_operand.hbm [shape: f32[1,4], index: 1, kind: output, shape index: {0}]   ;;  %s1158_s2 = inlined_call_operand.hbm [shape: f32[1,4], index: 2, kind: output, shape index: {1}]  }
   0x1   :  { %9 = vsyncpa [#allocation5], 0  ;;  %vm16_vm0 = vcmask 24576   ;;  %v500_v0 = vmov 0.0   ;;  %v19_v1 = vld [vmem:[%s1156_s0] sm:$0xff]  ;;  %v20_v2 = vld [vmem:[%s1156_s0 + $0x8] sm:$0xff] }
   0x2   :  { %17 = vst.msk [vmem:[#allocation2] sm:$0x1] %vm16_vm0, %v500_v0  ;;  %18 = vst.msk [vmem:[#allocation4] sm:$0x1] %vm16_vm0, %v500_v0  ;;  %v21_v3 = vld [vmem:[%s1156_s0 + $0x10] sm:$0xff]  ;;  %vm84_vm1 = vcmask 31744   ;;  %v222_v55 = vmul.f32 %v19_v1, %v19_v1  ;;  %v223_v56 = vmul.f32 %v20_v2, %v20_v2 }
   0x3   :  { %v85_v4 = vsel %vm84_vm1, %v19_v1, 0.0  ;;  %v86_v5 = vsel %vm84_vm1, %v20_v2, 0.0  ;;  %v88_v6 = vsel %vm84_vm1, %v21_v3, 0.0  ;;  %v22_v7 = vld [vmem:[%s1156_s0 + $0x18] sm:$0xff]  ;;  %v23_v10 = vld [vmem:[%s1156_s0 + $0x20] sm:$0xff]  ;;  %v24_v13 = vld [vmem:[%s1156_s0 + $0x28] sm:$0xff]  ;;  %v224_v57 = vmul.f32 %v21_v3, %v21_v3 }
   0x4   :  { %v87_v8 = vadd.f32 %v86_v5, %v85_v4  ;;  %v90_v9 = vsel %vm84_vm1, %v22_v7, 0.0  ;;  %v92_v12 = vsel %vm84_vm1, %v23_v10, 0.0  ;;  %v94_v15 = vsel %vm84_vm1, %v24_v13, 0.0  ;;  %v547_v16 = vld [vmem:[%s1156_s0 + $0x30] sm:$0xff]  ;;  %v554_v19 = vld [vmem:[%s1156_s0 + $0x38] sm:$0xff]  ;;  %v561_v22 = vld [vmem:[%s1156_s0 + $0x40] sm:$0xff] }
   0x5   :  { %v96_v18 = vsel %vm84_vm1, %v547_v16, 0.0  ;;  %v98_v21 = vsel %vm84_vm1, %v554_v19, 0.0  ;;  %v100_v24 = vsel %vm84_vm1, %v561_v22, 0.0  ;;  %v568_v25 = vld [vmem:[%s1156_s0 + $0x48] sm:$0xff]  ;;  %v575_v28 = vld [vmem:[%s1156_s0 + $0x50] sm:$0xff]  ;;  %v582_v31 = vld [vmem:[%s1156_s0 + $0x58] sm:$0xff]  ;;  %v225_v61 = vmul.f32 %v22_v7, %v22_v7 }
   0x6   :  { %v89_v11 = vadd.f32 %v88_v6, %v87_v8  ;;  %v102_v27 = vsel %vm84_vm1, %v568_v25, 0.0  ;;  %v104_v30 = vsel %vm84_vm1, %v575_v28, 0.0  ;;  %v106_v33 = vsel %vm84_vm1, %v582_v31, 0.0  ;;  %v589_v34 = vld [vmem:[%s1156_s0 + $0x60] sm:$0xff]  ;;  %v596_v37 = vld [vmem:[%s1156_s0 + $0x68] sm:$0xff]  ;;  %v603_v40 = vld [vmem:[%s1156_s0 + $0x70] sm:$0xff] }
   0x7   :  { %v108_v36 = vsel %vm84_vm1, %v589_v34, 0.0  ;;  %v110_v39 = vsel %vm84_vm1, %v596_v37, 0.0  ;;  %v112_v42 = vsel %vm84_vm1, %v603_v40, 0.0  ;;  %v610_v43 = vld [vmem:[%s1156_s0 + $0x78] sm:$0xff]  ;;  %v617_v46 = vld [vmem:[%s1156_s0 + $0x80] sm:$0xff]  ;;  %v624_v49 = vld [vmem:[%s1156_s0 + $0x88] sm:$0xff]  ;;  %v226_v0 = vmul.f32 %v23_v10, %v23_v10 }
   0x8   :  { %v91_v14 = vadd.f32 %v90_v9, %v89_v11  ;;  %v114_v45 = vsel %vm84_vm1, %v610_v43, 0.0  ;;  %v116_v48 = vsel %vm84_vm1, %v617_v46, 0.0  ;;  %v118_v51 = vsel %vm84_vm1, %v624_v49, 0.0  ;;  %v631_v52 = vld [vmem:[%s1156_s0 + $0x90] sm:$0xff]  ;;  %v638_v58 = vld [vmem:[%s1156_s0 + $0x98] sm:$0xff]  ;;  %v645_v62 = vld [vmem:[%s1156_s0 + $0xa0] sm:$0xff] }
   0x9   :  { %v120_v54 = vsel %vm84_vm1, %v631_v52, 0.0  ;;  %v122_v60 = vsel %vm84_vm1, %v638_v58, 0.0  ;;  %v124_v1 = vsel %vm84_vm1, %v645_v62, 0.0  ;;  %v286_v2 = vsel %vm84_vm1, %v222_v55, 0.0  ;;  %v655_v5 = vld [vmem:[%s1156_s0 + $0xa8] sm:$0xff]  ;;  %v663_v11 = vld [vmem:[%s1156_s0 + $0xb0] sm:$0xff] }
   0xa   :  { %v93_v17 = vadd.f32 %v92_v12, %v91_v14  ;;  %v287_v3 = vsel %vm84_vm1, %v223_v56, 0.0  ;;  %v289_v4 = vsel %vm84_vm1, %v224_v57, 0.0  ;;  %v126_v8 = vsel %vm84_vm1, %v655_v5, 0.0 }
   0xb   :  { %v288_v7 = vadd.f32 %v287_v3, %v286_v2  ;;  %v227_v9 = vmul.f32 %v24_v13, %v24_v13  ;;  %v291_v10 = vsel %vm84_vm1, %v225_v61, 0.0  ;;  %v673_v13 = vld [vmem:[%s1156_s0 + $0xb8] sm:$0xff]  ;;  %v235_v2 = vmul.f32 %v596_v37, %v596_v37 }
   0xc   :  { %v95_v20 = vadd.f32 %v94_v15, %v93_v17  ;;  %v128_v15 = vsel %vm84_vm1, %v663_v11, 0.0  ;;  %v228_v17 = vmul.f32 %v547_v16, %v547_v16  ;;  %v683_v16 = vld [vmem:[%s1156_s0 + $0xc0] sm:$0xff]  ;;  %v753_v37 = vld [vmem:[%s1156_s0 + $0xf8] sm:$0xff] }
   0xd   :  { %v290_v14 = vadd.f32 %v289_v4, %v288_v7 }
   0xe   :  { %v97_v23 = vadd.f32 %v96_v18, %v95_v20  ;;  %v293_v18 = vsel %vm84_vm1, %v226_v0, 0.0 }
  0x10   :  { %v99_v26 = vadd.f32 %v98_v21, %v97_v23  ;;  %v292_v21 = vadd.f32 %v291_v10, %v290_v14  ;;  %v130_v23 = vsel %vm84_vm1, %v673_v13, 0.0  ;;  %v146_v14 = vsel %vm84_vm1, %v753_v37, 0.0 }
  0x12   :  { %v101_v29 = vadd.f32 %v100_v24, %v99_v26  ;;  %v229_v24 = vmul.f32 %v554_v19, %v554_v19  ;;  %v295_v26 = vsel %vm84_vm1, %v227_v9, 0.0  ;;  %v693_v19 = vld [vmem:[%s1156_s0 + $0xc8] sm:$0xff] }
  0x14   :  { %v103_v32 = vadd.f32 %v102_v27, %v101_v29  ;;  %v294_v29 = vadd.f32 %v293_v18, %v292_v21 }
  0x16   :  { %v105_v35 = vadd.f32 %v104_v30, %v103_v32  ;;  %v132_v30 = vsel %vm84_vm1, %v683_v16, 0.0  ;;  %v230_v32 = vmul.f32 %v561_v22, %v561_v22  ;;  %v703_v22 = vld [vmem:[%s1156_s0 + $0xd0] sm:$0xff] }
  0x18   :  { %v107_v38 = vadd.f32 %v106_v33, %v105_v35  ;;  %v297_v33 = vsel %vm84_vm1, %v228_v17, 0.0  ;;  %v311_v17 = vsel %vm84_vm1, %v235_v2, 0.0 }
  0x1a   :  { %v109_v41 = vadd.f32 %v108_v36, %v107_v38  ;;  %v296_v36 = vadd.f32 %v295_v26, %v294_v29  ;;  %v134_v38 = vsel %vm84_vm1, %v693_v19, 0.0 }
  0x1c   :  { %v111_v44 = vadd.f32 %v110_v39, %v109_v41  ;;  %v231_v39 = vmul.f32 %v568_v25, %v568_v25  ;;  %v299_v41 = vsel %vm84_vm1, %v229_v24, 0.0  ;;  %v713_v25 = vld [vmem:[%s1156_s0 + $0xd8] sm:$0xff] }
  0x1e   :  { %v113_v47 = vadd.f32 %v112_v42, %v111_v44  ;;  %v298_v44 = vadd.f32 %v297_v33, %v296_v36  ;;  %v303_v55 = vsel %vm84_vm1, %v231_v39, 0.0 }
  0x20   :  { %v115_v50 = vadd.f32 %v114_v45, %v113_v47  ;;  %v136_v45 = vsel %vm84_vm1, %v703_v22, 0.0  ;;  %v232_v47 = vmul.f32 %v575_v28, %v575_v28  ;;  %v723_v28 = vld [vmem:[%s1156_s0 + $0xe0] sm:$0xff] }
  0x22   :  { %v117_v53 = vadd.f32 %v116_v48, %v115_v50  ;;  %v301_v48 = vsel %vm84_vm1, %v230_v32, 0.0  ;;  %v305_v61 = vsel %vm84_vm1, %v232_v47, 0.0 }
  0x24   :  { %v119_v59 = vadd.f32 %v118_v51, %v117_v53  ;;  %v300_v51 = vadd.f32 %v299_v41, %v298_v44  ;;  %v138_v53 = vsel %vm84_vm1, %v713_v25, 0.0 }
  0x26   :  { %v121_v63 = vadd.f32 %v120_v54, %v119_v59  ;;  %v233_v54 = vmul.f32 %v582_v31, %v582_v31  ;;  %v302_v57 = vadd.f32 %v301_v48, %v300_v51  ;;  %v140_v59 = vsel %vm84_vm1, %v723_v28, 0.0  ;;  %v733_v31 = vld [vmem:[%s1156_s0 + $0xe8] sm:$0xff] }
  0x28   :  { %v123_v6 = vadd.f32 %v122_v60, %v121_v63  ;;  %v234_v60 = vmul.f32 %v589_v34, %v589_v34  ;;  %v304_v0 = vadd.f32 %v303_v55, %v302_v57  ;;  %v307_v3 = vsel %vm84_vm1, %v233_v54, 0.0  ;;  %v743_v34 = vld [vmem:[%s1156_s0 + $0xf0] sm:$0xff] }
  0x29   :  { %v144_v7 = vsel %vm84_vm1, %v743_v34, 0.0 }
  0x2a   :  { %v125_v12 = vadd.f32 %v124_v1, %v123_v6  ;;  %v142_v1 = vsel %vm84_vm1, %v733_v31, 0.0  ;;  %v306_v6 = vadd.f32 %v305_v61, %v304_v0  ;;  %v309_v9 = vsel %vm84_vm1, %v234_v60, 0.0 }
  0x2c   :  { %v127_v20 = vadd.f32 %v126_v8, %v125_v12  ;;  %v236_v8 = vmul.f32 %v603_v40, %v603_v40  ;;  %v308_v12 = vadd.f32 %v307_v3, %v306_v6  ;;  %v763_v40 = vld [vmem:[%s1156_s0 + $0x100] sm:$0xff] }
  0x2d   :  { %v148_v21 = vsel %vm84_vm1, %v763_v40, 0.0 }
  0x2e   :  { %v129_v27 = vadd.f32 %v128_v15, %v127_v20  ;;  %v237_v15 = vmul.f32 %v610_v43, %v610_v43  ;;  %v310_v20 = vadd.f32 %v309_v9, %v308_v12  ;;  %v313_v24 = vsel %vm84_vm1, %v236_v8, 0.0  ;;  %v773_v43 = vld [vmem:[%s1156_s0 + $0x108] sm:$0xff] }
  0x2f   :  { %v150_v29 = vsel %vm84_vm1, %v773_v43, 0.0 }
  0x30   :  { %v131_v35 = vadd.f32 %v130_v23, %v129_v27  ;;  %v238_v23 = vmul.f32 %v617_v46, %v617_v46  ;;  %v312_v27 = vadd.f32 %v311_v17, %v310_v20  ;;  %v315_v32 = vsel %vm84_vm1, %v237_v15, 0.0  ;;  %v783_v46 = vld [vmem:[%s1156_s0 + $0x110] sm:$0xff] }
  0x31   :  { %v152_v36 = vsel %vm84_vm1, %v783_v46, 0.0 }
  0x32   :  { %v133_v42 = vadd.f32 %v132_v30, %v131_v35  ;;  %v239_v30 = vmul.f32 %v624_v49, %v624_v49  ;;  %v314_v35 = vadd.f32 %v313_v24, %v312_v27  ;;  %v317_v39 = vsel %vm84_vm1, %v238_v23, 0.0  ;;  %v793_v49 = vld [vmem:[%s1156_s0 + $0x118] sm:$0xff] }
  0x33   :  { %v154_v44 = vsel %vm84_vm1, %v793_v49, 0.0 }
  0x34   :  { %v135_v50 = vadd.f32 %v134_v38, %v133_v42  ;;  %v240_v38 = vmul.f32 %v631_v52, %v631_v52  ;;  %v316_v42 = vadd.f32 %v315_v32, %v314_v35  ;;  %v319_v47 = vsel %vm84_vm1, %v239_v30, 0.0  ;;  %v803_v52 = vld [vmem:[%s1156_s0 + $0x120] sm:$0xff] }
  0x35   :  { %v156_v51 = vsel %vm84_vm1, %v803_v52, 0.0 }
  0x36   :  { %v137_v56 = vadd.f32 %v136_v45, %v135_v50  ;;  %v241_v45 = vmul.f32 %v638_v58, %v638_v58  ;;  %v318_v50 = vadd.f32 %v317_v39, %v316_v42  ;;  %v321_v54 = vsel %vm84_vm1, %v240_v38, 0.0  ;;  %v813_v58 = vld [vmem:[%s1156_s0 + $0x128] sm:$0xff] }
  0x37   :  { %v158_v57 = vsel %vm84_vm1, %v813_v58, 0.0 }
  0x38   :  { %v139_v63 = vadd.f32 %v138_v53, %v137_v56  ;;  %v242_v53 = vmul.f32 %v645_v62, %v645_v62  ;;  %v320_v56 = vadd.f32 %v319_v47, %v318_v50  ;;  %v323_v60 = vsel %vm84_vm1, %v241_v45, 0.0  ;;  %v823_v62 = vld [vmem:[%s1156_s0 + $0x130] sm:$0xff] }
  0x39   :  { %v160_v0 = vsel %vm84_vm1, %v823_v62, 0.0 }
  0x3a   :  { %v141_v4 = vadd.f32 %v140_v59, %v139_v63  ;;  %v243_v59 = vmul.f32 %v655_v5, %v655_v5  ;;  %v322_v63 = vadd.f32 %v321_v54, %v320_v56  ;;  %v325_v2 = vsel %vm84_vm1, %v242_v53, 0.0  ;;  %v833_v5 = vld [vmem:[%s1156_s0 + $0x138] sm:$0xff] }
  0x3b   :  { %v162_v6 = vsel %vm84_vm1, %v833_v5, 0.0 }
  0x3c   :  { %v143_v10 = vadd.f32 %v142_v1, %v141_v4  ;;  %v244_v1 = vmul.f32 %v663_v11, %v663_v11  ;;  %v324_v4 = vadd.f32 %v323_v60, %v322_v63  ;;  %v327_v8 = vsel %vm84_vm1, %v243_v59, 0.0  ;;  %v843_v11 = vld [vmem:[%s1156_s0 + $0x140] sm:$0xff] }
  0x3d   :  { %v164_v12 = vsel %vm84_vm1, %v843_v11, 0.0 }
  0x3e   :  { %v145_v18 = vadd.f32 %v144_v7, %v143_v10  ;;  %v245_v7 = vmul.f32 %v673_v13, %v673_v13  ;;  %v326_v10 = vadd.f32 %v325_v2, %v324_v4  ;;  %v329_v15 = vsel %vm84_vm1, %v244_v1, 0.0  ;;  %v853_v13 = vld [vmem:[%s1156_s0 + $0x148] sm:$0xff] }
  0x3f   :  { %v166_v20 = vsel %vm84_vm1, %v853_v13, 0.0 }
  0x40   :  { %v147_v26 = vadd.f32 %v146_v14, %v145_v18  ;;  %v246_v14 = vmul.f32 %v683_v16, %v683_v16  ;;  %v328_v18 = vadd.f32 %v327_v8, %v326_v10  ;;  %v331_v23 = vsel %vm84_vm1, %v245_v7, 0.0  ;;  %v863_v16 = vld [vmem:[%s1156_s0 + $0x150] sm:$0xff] }
  0x41   :  { %v168_v27 = vsel %vm84_vm1, %v863_v16, 0.0 }
  0x42   :  { %v149_v33 = vadd.f32 %v148_v21, %v147_v26  ;;  %v247_v21 = vmul.f32 %v693_v19, %v693_v19  ;;  %v330_v26 = vadd.f32 %v329_v15, %v328_v18  ;;  %v333_v30 = vsel %vm84_vm1, %v246_v14, 0.0  ;;  %v873_v19 = vld [vmem:[%s1156_s0 + $0x158] sm:$0xff] }
  0x43   :  { %v170_v35 = vsel %vm84_vm1, %v873_v19, 0.0 }
  0x44   :  { %v151_v41 = vadd.f32 %v150_v29, %v149_v33  ;;  %v248_v29 = vmul.f32 %v703_v22, %v703_v22  ;;  %v332_v33 = vadd.f32 %v331_v23, %v330_v26  ;;  %v335_v38 = vsel %vm84_vm1, %v247_v21, 0.0  ;;  %v883_v22 = vld [vmem:[%s1156_s0 + $0x160] sm:$0xff] }
  0x45   :  { %v172_v42 = vsel %vm84_vm1, %v883_v22, 0.0 }
  0x46   :  { %v153_v48 = vadd.f32 %v152_v36, %v151_v41  ;;  %v249_v36 = vmul.f32 %v713_v25, %v713_v25  ;;  %v334_v41 = vadd.f32 %v333_v30, %v332_v33  ;;  %v337_v45 = vsel %vm84_vm1, %v248_v29, 0.0  ;;  %v893_v25 = vld [vmem:[%s1156_s0 + $0x168] sm:$0xff] }
  0x47   :  { %v174_v50 = vsel %vm84_vm1, %v893_v25, 0.0 }
  0x48   :  { %v155_v55 = vadd.f32 %v154_v44, %v153_v48  ;;  %v250_v44 = vmul.f32 %v723_v28, %v723_v28  ;;  %v336_v48 = vadd.f32 %v335_v38, %v334_v41  ;;  %v339_v53 = vsel %vm84_vm1, %v249_v36, 0.0  ;;  %v903_v28 = vld [vmem:[%s1156_s0 + $0x170] sm:$0xff] }
  0x49   :  { %v176_v56 = vsel %vm84_vm1, %v903_v28, 0.0 }
  0x4a   :  { %v157_v61 = vadd.f32 %v156_v51, %v155_v55  ;;  %v251_v51 = vmul.f32 %v733_v31, %v733_v31  ;;  %v338_v55 = vadd.f32 %v337_v45, %v336_v48  ;;  %v341_v59 = vsel %vm84_vm1, %v250_v44, 0.0  ;;  %v913_v31 = vld [vmem:[%s1156_s0 + $0x178] sm:$0xff] }
  0x4b   :  { %v178_v63 = vsel %vm84_vm1, %v913_v31, 0.0 }
  0x4c   :  { %v159_v3 = vadd.f32 %v158_v57, %v157_v61  ;;  %v252_v57 = vmul.f32 %v743_v34, %v743_v34  ;;  %v340_v61 = vadd.f32 %v339_v53, %v338_v55  ;;  %v343_v1 = vsel %vm84_vm1, %v251_v51, 0.0  ;;  %v923_v34 = vld [vmem:[%s1156_s0 + $0x180] sm:$0xff] }
  0x4d   :  { %v180_v4 = vsel %vm84_vm1, %v923_v34, 0.0 }
  0x4e   :  { %v161_v9 = vadd.f32 %v160_v0, %v159_v3  ;;  %v253_v0 = vmul.f32 %v753_v37, %v753_v37  ;;  %v342_v3 = vadd.f32 %v341_v59, %v340_v61  ;;  %v345_v7 = vsel %vm84_vm1, %v252_v57, 0.0  ;;  %v933_v37 = vld [vmem:[%s1156_s0 + $0x188] sm:$0xff] }
  0x4f   :  { %v182_v10 = vsel %vm84_vm1, %v933_v37, 0.0 }
  0x50   :  { %v163_v17 = vadd.f32 %v162_v6, %v161_v9  ;;  %v254_v6 = vmul.f32 %v763_v40, %v763_v40  ;;  %v344_v9 = vadd.f32 %v343_v1, %v342_v3  ;;  %v347_v14 = vsel %vm84_vm1, %v253_v0, 0.0  ;;  %v943_v40 = vld [vmem:[%s1156_s0 + $0x190] sm:$0xff] }
  0x51   :  { %v184_v18 = vsel %vm84_vm1, %v943_v40, 0.0 }
  0x52   :  { %v165_v24 = vadd.f32 %v164_v12, %v163_v17  ;;  %v255_v12 = vmul.f32 %v773_v43, %v773_v43  ;;  %v346_v17 = vadd.f32 %v345_v7, %v344_v9  ;;  %v349_v21 = vsel %vm84_vm1, %v254_v6, 0.0  ;;  %v953_v43 = vld [vmem:[%s1156_s0 + $0x198] sm:$0xff] }
  0x53   :  { %v186_v26 = vsel %vm84_vm1, %v953_v43, 0.0 }
  0x54   :  { %v167_v32 = vadd.f32 %v166_v20, %v165_v24  ;;  %v256_v20 = vmul.f32 %v783_v46, %v783_v46  ;;  %v348_v24 = vadd.f32 %v347_v14, %v346_v17  ;;  %v351_v29 = vsel %vm84_vm1, %v255_v12, 0.0  ;;  %v963_v46 = vld [vmem:[%s1156_s0 + $0x1a0] sm:$0xff] }
  0x55   :  { %v188_v33 = vsel %vm84_vm1, %v963_v46, 0.0 }
  0x56   :  { %v169_v39 = vadd.f32 %v168_v27, %v167_v32  ;;  %v257_v27 = vmul.f32 %v793_v49, %v793_v49  ;;  %v350_v32 = vadd.f32 %v349_v21, %v348_v24  ;;  %v353_v36 = vsel %vm84_vm1, %v256_v20, 0.0  ;;  %v973_v49 = vld [vmem:[%s1156_s0 + $0x1a8] sm:$0xff] }
  0x57   :  { %v190_v41 = vsel %vm84_vm1, %v973_v49, 0.0 }
  0x58   :  { %v171_v47 = vadd.f32 %v170_v35, %v169_v39  ;;  %v258_v35 = vmul.f32 %v803_v52, %v803_v52  ;;  %v352_v39 = vadd.f32 %v351_v29, %v350_v32  ;;  %v355_v44 = vsel %vm84_vm1, %v257_v27, 0.0  ;;  %v983_v52 = vld [vmem:[%s1156_s0 + $0x1b0] sm:$0xff] }
  0x59   :  { %v192_v48 = vsel %vm84_vm1, %v983_v52, 0.0 }
  0x5a   :  { %v173_v54 = vadd.f32 %v172_v42, %v171_v47  ;;  %v259_v42 = vmul.f32 %v813_v58, %v813_v58  ;;  %v354_v47 = vadd.f32 %v353_v36, %v352_v39  ;;  %v357_v51 = vsel %vm84_vm1, %v258_v35, 0.0  ;;  %v993_v58 = vld [vmem:[%s1156_s0 + $0x1b8] sm:$0xff] }
  0x5b   :  { %v194_v55 = vsel %vm84_vm1, %v993_v58, 0.0 }
  0x5c   :  { %v175_v60 = vadd.f32 %v174_v50, %v173_v54  ;;  %v260_v50 = vmul.f32 %v823_v62, %v823_v62  ;;  %v356_v54 = vadd.f32 %v355_v44, %v354_v47  ;;  %v359_v57 = vsel %vm84_vm1, %v259_v42, 0.0  ;;  %v1003_v62 = vld [vmem:[%s1156_s0 + $0x1c0] sm:$0xff] }
  0x5d   :  { %v196_v61 = vsel %vm84_vm1, %v1003_v62, 0.0 }
  0x5e   :  { %v177_v2 = vadd.f32 %v176_v56, %v175_v60  ;;  %v261_v56 = vmul.f32 %v833_v5, %v833_v5  ;;  %v358_v60 = vadd.f32 %v357_v51, %v356_v54  ;;  %v361_v0 = vsel %vm84_vm1, %v260_v50, 0.0  ;;  %v1013_v5 = vld [vmem:[%s1156_s0 + $0x1c8] sm:$0xff] }
  0x5f   :  { %v198_v3 = vsel %vm84_vm1, %v1013_v5, 0.0 }
  0x60   :  { %v179_v8 = vadd.f32 %v178_v63, %v177_v2  ;;  %v262_v63 = vmul.f32 %v843_v11, %v843_v11  ;;  %v360_v2 = vadd.f32 %v359_v57, %v358_v60  ;;  %v363_v6 = vsel %vm84_vm1, %v261_v56, 0.0  ;;  %v1023_v11 = vld [vmem:[%s1156_s0 + $0x1d0] sm:$0xff] }
  0x61   :  { %v200_v9 = vsel %vm84_vm1, %v1023_v11, 0.0  ;;  %v271_v57 = vmul.f32 %v933_v37, %v933_v37  ;;  %v274_v37 = vmul.f32 %v963_v46, %v963_v46 }
  0x62   :  { %v181_v15 = vadd.f32 %v180_v4, %v179_v8  ;;  %v263_v4 = vmul.f32 %v853_v13, %v853_v13  ;;  %v362_v8 = vadd.f32 %v361_v0, %v360_v2  ;;  %v365_v12 = vsel %vm84_vm1, %v262_v63, 0.0  ;;  %v1033_v13 = vld [vmem:[%s1156_s0 + $0x1d8] sm:$0xff] }
  0x63   :  { %v202_v17 = vsel %vm84_vm1, %v1033_v13, 0.0  ;;  %v383_v2 = vsel %vm84_vm1, %v271_v57, 0.0 }
  0x64   :  { %v183_v23 = vadd.f32 %v182_v10, %v181_v15  ;;  %v264_v10 = vmul.f32 %v863_v16, %v863_v16  ;;  %v364_v15 = vadd.f32 %v363_v6, %v362_v8  ;;  %v367_v20 = vsel %vm84_vm1, %v263_v4, 0.0  ;;  %v1043_v16 = vld [vmem:[%s1156_s0 + $0x1e0] sm:$0xff] }
  0x65   :  { %v204_v24 = vsel %vm84_vm1, %v1043_v16, 0.0 }
  0x66   :  { %v185_v30 = vadd.f32 %v184_v18, %v183_v23  ;;  %v265_v18 = vmul.f32 %v873_v19, %v873_v19  ;;  %v366_v23 = vadd.f32 %v365_v12, %v364_v15  ;;  %v369_v27 = vsel %vm84_vm1, %v264_v10, 0.0  ;;  %v1053_v19 = vld [vmem:[%s1156_s0 + $0x1e8] sm:$0xff] }
  0x67   :  { %v206_v32 = vsel %vm84_vm1, %v1053_v19, 0.0  ;;  %v389_v15 = vsel %vm84_vm1, %v274_v37, 0.0 }
  0x68   :  { %v187_v38 = vadd.f32 %v186_v26, %v185_v30  ;;  %v266_v26 = vmul.f32 %v883_v22, %v883_v22  ;;  %v368_v30 = vadd.f32 %v367_v20, %v366_v23  ;;  %v371_v35 = vsel %vm84_vm1, %v265_v18, 0.0  ;;  %v1063_v22 = vld [vmem:[%s1156_s0 + $0x1f0] sm:$0xff] }
  0x69   :  { %v208_v39 = vsel %vm84_vm1, %v1063_v22, 0.0  ;;  %v277_v18 = vmul.f32 %v993_v58, %v993_v58  ;;  %v278_v23 = vmul.f32 %v1003_v62, %v1003_v62 }
  0x6a   :  { %v189_v45 = vadd.f32 %v188_v33, %v187_v38  ;;  %v267_v33 = vmul.f32 %v893_v25, %v893_v25  ;;  %v370_v38 = vadd.f32 %v369_v27, %v368_v30  ;;  %v373_v42 = vsel %vm84_vm1, %v266_v26, 0.0  ;;  %v1073_v25 = vld [vmem:[%s1156_s0 + $0x1f8] sm:$0xff]  ;;  %s501_s0 = smov [#allocation2]  }
  0x6b   :  { %v210_v47 = vsel %vm84_vm1, %v1073_v25, 0.0  ;;  %s427_s25 = sshll.u32 %s501_s0, 4  ;;  %v279_v26 = vmul.f32 %v1013_v5, %v1013_v5  ;;  %v395_v27 = vsel %vm84_vm1, %v277_v18, 0.0  ;;  %s428_s25 = int_to_ptr.vmem [resolvable:$true] %s427_s25 }
  0x6c   :  { %v191_v53 = vadd.f32 %v190_v41, %v189_v45  ;;  %v268_v41 = vmul.f32 %v903_v28, %v903_v28  ;;  %v372_v45 = vadd.f32 %v371_v35, %v370_v38  ;;  %v375_v50 = vsel %vm84_vm1, %v267_v33, 0.0  ;;  %s452_s26 = scalar_lea.vmem %s428_s25, 16  ;;  %s456_s27 = scalar_lea.vmem %s428_s25, 32 }
  0x6d   :  { %v270_v28 = vmul.f32 %v923_v34, %v923_v34  ;;  %v273_v34 = vmul.f32 %v953_v43, %v953_v43  ;;  %v276_v43 = vmul.f32 %v983_v52, %v983_v52  ;;  %p453_p0 = scmp.ne.s32.totalorder %s428_s25, %s452_s26  ;;  %p457_p1 = scmp.lt.s32.totalorder %s428_s25, %s428_s25 }
  0x6e   :  { %v193_v59 = vadd.f32 %v192_v48, %v191_v53  ;;  %v269_v48 = vmul.f32 %v913_v31, %v913_v31  ;;  %v374_v53 = vadd.f32 %v373_v42, %v372_v45  ;;  %v377_v54 = vsel %vm84_vm1, %v268_v41, 0.0  ;;  %p458_p2 = scmp.lt.s32.totalorder %s456_s27, %s452_s26 }
  0x6f   :  { %v272_v31 = vmul.f32 %v943_v40, %v943_v40  ;;  %v381_v63 = vsel %vm84_vm1, %v270_v28, 0.0  ;;  %v275_v40 = vmul.f32 %v973_v49, %v973_v49 }
  0x70   :  { %v195_v1 = vadd.f32 %v194_v55, %v193_v59  ;;  %v376_v56 = vadd.f32 %v375_v50, %v374_v53  ;;  %v379_v59 = vsel %vm84_vm1, %v269_v48, 0.0  ;;  %p459_p3 = por %p458_p2, %p457_p1 }
  0x71   :  { %v385_v6 = vsel %vm84_vm1, %v272_v31, 0.0  ;;  %v391_v20 = vsel %vm84_vm1, %v275_v40, 0.0 }
  0x72   :  { %v197_v7 = vadd.f32 %v196_v61, %v195_v1  ;;  %v378_v61 = vadd.f32 %v377_v54, %v376_v56  ;;  %p460_p4 = pnand %p459_p3, %p453_p0 }
  0x74   :  { %v199_v14 = vadd.f32 %v198_v3, %v197_v7  ;;  %v380_v1 = vadd.f32 %v379_v59, %v378_v61 }
  0x76   :  { %v201_v21 = vadd.f32 %v200_v9, %v199_v14  ;;  %v382_v4 = vadd.f32 %v381_v63, %v380_v1  ;;  %v387_v9 = vsel %vm84_vm1, %v273_v34, 0.0  ;;  %v83_v14 = vld [vmem:[#allocation2] sm:$0x1] }
  0x78   :  { %v203_v29 = vadd.f32 %v202_v17, %v201_v21  ;;  %v384_v8 = vadd.f32 %v383_v2, %v382_v4 }
  0x7a   :  { %v205_v36 = vadd.f32 %v204_v24, %v203_v29  ;;  %v386_v12 = vadd.f32 %v385_v6, %v384_v8  ;;  %v393_v24 = vsel %vm84_vm1, %v276_v43, 0.0 }
  0x7c   :  { %v207_v44 = vadd.f32 %v206_v32, %v205_v36  ;;  %v388_v17 = vadd.f32 %v387_v9, %v386_v12 }
  0x7e   :  { %v209_v51 = vadd.f32 %v208_v39, %v207_v44  ;;  %v390_v21 = vadd.f32 %v389_v15, %v388_v17 }
  0x80   :  { %v211_v55 = vadd.f32 %v210_v47, %v209_v51  ;;  %v392_v52 = vadd.f32 %v391_v20, %v390_v21 }
  0x82   :  { %v212_v60 = vrot.slane %v211_v55, 4 }
  0x84   :  { %v213_v0 = vadd.f32 %v212_v60, %v211_v55 }
  0x86   :  { %v214_v3 = vrot.slane %v213_v0, 2 }
  0x88   :  { %v215_v7 = vadd.f32 %v214_v3, %v213_v0 }
  0x8a   :  { %v216_v10 = vrot.slane %v215_v7, 1 }
  0x8c   :  { %v217_v46 = vadd.f32 %v216_v10, %v215_v7 }
  0x8e   :  { %v218_v49 = vadd.f32 %v217_v46, %v83_v14 }
  0x90   :  { %220 = vst.msk [vmem:[#allocation2] sm:$0x1] %vm16_vm0, %v218_v49 }
  0x91   :  { %463 = shalt.err (!%p460_p4)
}
  0x92   :  { %s464_s30 = scalar_lea.hbm %s1157_s1, 16 }
  0x93   :  { %p465_p5 = scmp.ne.s32.totalorder %s1157_s1, %s464_s30  ;;  %p468_p6 = scmp.lt.u32.totalorder %s464_s30, %s1157_s1 }
  0x95   :  { %p470_p7 = pnand %p468_p6, %p465_p5 }
  0x97   :  { %473 = shalt.err (!%p470_p7)
}
  0x98   :  { %430 = dma.vmem_to_hbm [thread:$0]  %s428_s25, 16, %s1157_s1, [#allocation3]   ;;  %v394_v58 = vadd.f32 %v393_v24, %v392_v52  ;;  %v280_v62 = vmul.f32 %v1023_v11, %v1023_v11  ;;  %v397_v5 = vsel %vm84_vm1, %v278_v23, 0.0  ;;  %v281_v30 = vmul.f32 %v1033_v13, %v1033_v13  ;;  %v221_v57 = vld [vmem:[#allocation4] sm:$0x1] }
  0x99   :  { %v399_v32 = vsel %vm84_vm1, %v279_v26, 0.0  ;;  %v282_v35 = vmul.f32 %v1043_v16, %v1043_v16  ;;  %v283_v39 = vmul.f32 %v1053_v19, %v1053_v19  ;;  %v284_v42 = vmul.f32 %v1063_v22, %v1063_v22  ;;  %s502_s1 = smov [#allocation4]  }
  0x9a   :  { %v396_v29 = vadd.f32 %v395_v27, %v394_v58  ;;  %v401_v36 = vsel %vm84_vm1, %v280_v62, 0.0  ;;  %v403_v11 = vsel %vm84_vm1, %v281_v30, 0.0  ;;  %v285_v45 = vmul.f32 %v1073_v25, %v1073_v25  ;;  %s437_s9 = sshll.u32 %s502_s1, 4  ;;  %s438_s9 = int_to_ptr.vmem [resolvable:$true] %s437_s9 }
  0x9b   :  { %v405_v13 = vsel %vm84_vm1, %v282_v35, 0.0  ;;  %v407_v16 = vsel %vm84_vm1, %v283_v39, 0.0  ;;  %v409_v48 = vsel %vm84_vm1, %v284_v42, 0.0  ;;  %s474_s10 = scalar_lea.vmem %s438_s9, 16  ;;  %s478_s11 = scalar_lea.vmem %s438_s9, 32 }
  0x9c   :  { %v398_v33 = vadd.f32 %v397_v5, %v396_v29  ;;  %v411_v19 = vsel %vm84_vm1, %v285_v45, 0.0  ;;  %p475_p8 = scmp.ne.s32.totalorder %s438_s9, %s474_s10  ;;  %p479_p9 = scmp.lt.s32.totalorder %s438_s9, %s438_s9 }
  0x9d   :  { %p480_p10 = scmp.lt.s32.totalorder %s478_s11, %s474_s10 }
  0x9e   :  { %v400_v38 = vadd.f32 %v399_v32, %v398_v33 }
  0x9f   :  { %p481_p11 = por %p480_p10, %p479_p9 }
  0xa0   :  { %v402_v41 = vadd.f32 %v401_v36, %v400_v38 }
  0xa1   :  { %p482_p12 = pnand %p481_p11, %p475_p8 }
  0xa2   :  { %v404_v44 = vadd.f32 %v403_v11, %v402_v41 }
  0xa4   :  { %v406_v47 = vadd.f32 %v405_v13, %v404_v44 }
  0xa6   :  { %v408_v50 = vadd.f32 %v407_v16, %v406_v47 }
  0xa8   :  { %v410_v51 = vadd.f32 %v409_v48, %v408_v50 }
  0xaa   :  { %v412_v53 = vadd.f32 %v411_v19, %v410_v51 }
  0xac   :  { %v413_v28 = vrot.slane %v412_v53, 4 }
  0xae   :  { %v414_v54 = vadd.f32 %v413_v28, %v412_v53 }
  0xb0   :  { %v415_v55 = vrot.slane %v414_v54, 2 }
  0xb2   :  { %v416_v22 = vadd.f32 %v415_v55, %v414_v54 }
  0xb4   :  { %v417_v56 = vrot.slane %v416_v22, 1 }
  0xb6   :  { %v418_v59 = vadd.f32 %v417_v56, %v416_v22 }
  0xb8   :  { %v419_v25 = vadd.f32 %v418_v59, %v221_v57 }
  0xba   :  { %420 = vst.msk [vmem:[#allocation4] sm:$0x1] %vm16_vm0, %v419_v25 }
  0xbb   :  { %485 = shalt.err (!%p482_p12)
}
  0xbc   :  { %s486_s14 = scalar_lea.hbm %s1158_s2, 16 }
  0xbd   :  { %p487_p13 = scmp.ne.s32.totalorder %s1158_s2, %s486_s14  ;;  %p490_p0 = scmp.lt.u32.totalorder %s486_s14, %s1158_s2 }
  0xbf   :  { %p492_p1 = pnand %p490_p0, %p487_p13 }
  0xc1   :  { %495 = shalt.err (!%p492_p1)
}
  0xc2   :  { %440 = dma.vmem_to_hbm [thread:$0]  %s438_s9, 16, %s1158_s2, [#allocation5]  }
  0xc3   :  { %496 = dma.done.wait [#allocation3], 16  }
  0xc4   :  { %497 = vsyncadd [#allocation3], 4294967280 }
  0xc5   :  { %498 = dma.done.wait [#allocation5], 16  }
  0xc6   :  { %499 = vsyncadd [#allocation5], 4294967280 }
  0xc7   :  { %447 = vsyncpa [#allocation3], 1 }
  0xc8   :  { %448 = vsyncpa [#allocation5], 1 }

</bundles_post_ra>
